<compile_context>
chip_gen: v6e
topology: v6e:2x2x1
jax: 0.10.0
libtpu: 0.0.40
codegen_flags: <defaults>
</compile_context>

<pallas_src>
import math
import numpy as np
import jax
import jax.numpy as jnp
from jax import lax
from jax.experimental import pallas as pl
from jax.experimental.pallas import tpu as pltpu


def _make_kernel(out_channel, num_heads, hidden_seq, batch_block):
    head_dim = out_channel // num_heads

    def kernel(x_ref,        # (Bb, in_seq, in_channel)   bf16
               w_hs_ref,     # (hidden_seq, in_seq)       bf16
               b_hs_ref,     # (hidden_seq, 1)            f32
               w_qkv_ref,    # (in_channel, 3*OC)         bf16 (q-scale folded)
               b_qkv_ref,    # (1, 3*OC)                  f32  (q-scale folded)
               w_os_ref,     # (hidden_seq, out_seq)      bf16 (pre-transposed)
               b_os_ref,     # (1, out_seq)               f32
               o_ref):       # (Bb, out_seq, out_channel) f32
        w_hs = w_hs_ref[...]
        b_hs = b_hs_ref[...]

        # ---- Stage 1: hidden_seq projection, transpose-free ---------------
        #   (x.T @ Whs.T + b).T  ==  Whs @ x + b[:, None]
        # Batches are stacked on the M (sublane) axis so stage 2 is one wide
        # MXU matmul over all batches in the block.
        xp_blocks = []
        for b in range(batch_block):               # small, static -> unrolled
            xp_b = jnp.dot(w_hs, x_ref[b],
                           preferred_element_type=jnp.float32) + b_hs
            xp_blocks.append(xp_b)
        xp_all = jnp.concatenate(xp_blocks, axis=0).astype(jnp.bfloat16)
        # xp_all: (Bb*hidden_seq, in_channel)

        # ---- Stage 2: fused q/k/v projection for all batches at once ------
        qkv = jnp.dot(xp_all, w_qkv_ref[...],
                      preferred_element_type=jnp.float32) + b_qkv_ref[...]
        qkv_bf = qkv.astype(jnp.bfloat16)           # single cast, sliced below

        w_os = w_os_ref[...]
        b_os = b_os_ref[...]

        # TODO(synk): for production shapes (head_dim >= 128 / hidden_seq >~ 2k)
        # re-order the fused qkv columns per head and tile the hs x hs scores
        # flash-style; unnecessary at these tiny, single-vreg shapes.
        outs = []
        for b in range(batch_block):
            r0 = b * hidden_seq
            head_outs = []
            for h in range(num_heads):
                lo = h * head_dim
                qh = qkv_bf[r0:r0 + hidden_seq, lo:lo + head_dim]
                kh = qkv_bf[r0:r0 + hidden_seq,
                            out_channel + lo:out_channel + lo + head_dim]
                vh = qkv_bf[r0:r0 + hidden_seq,
                            2 * out_channel + lo:2 * out_channel + lo + head_dim]

                # q @ k.T without materializing k.T; 1/sqrt(head_dim) already
                # folded into the q projection weights/bias.
                scores = lax.dot_general(
                    qh, kh, (((1,), (1,)), ((), ())),
                    preferred_element_type=jnp.float32)
                scores = scores - jnp.max(scores, axis=-1, keepdims=True)
                e = jnp.exp(scores)                             # f32 (EUP)
                row_sum = jnp.sum(e, axis=-1, keepdims=True)    # f32

                # out_seq projection on UN-normalized exp; normalization is
                # deferred to the much smaller (hs, out_seq) result:
                #   softmax(s) @ Wos.T + b == (e @ Wos.T) * (1/rowsum) + b
                fs = jnp.dot(e.astype(jnp.bfloat16), w_os,
                             preferred_element_type=jnp.float32)
                flex = fs * pl.reciprocal(row_sum, approx=True) + b_os

                # flex.T @ v without materializing flex.T (sublane-axis
                # contraction; any XLU transpose hides behind the MXU here).
                out_h = lax.dot_general(
                    flex.astype(jnp.bfloat16), vh, (((0,), (0,)), ((), ())),
                    preferred_element_type=jnp.float32)         # (out_seq, hd)
                head_outs.append(out_h)
            outs.append(jnp.concatenate(head_outs, axis=-1))    # (out_seq, OC)

        # One merged store of the whole batch block.
        # TODO(synk): when out_channel < 128 at production scale, present the
        # output as a lane-dense (B, out_seq*out_channel) slab instead.
        o_ref[...] = jnp.stack(outs, axis=0).astype(o_ref.dtype)

    return kernel


def flexscale_seq_attention(x, params, *, out_channel, hidden_seq, out_seq,
                            num_heads, batch_block=None):
    """x: (B, in_seq, in_channel) f32 -> (B, out_seq, out_channel) f32."""
    B, in_seq, in_channel = x.shape
    assert out_channel % num_heads == 0
    head_dim = out_channel // num_heads
    (w_hs, b_hs, w_q, b_q, w_k, b_k, w_v, b_v, w_os, b_os) = params

    if batch_block is None:
        batch_block = next(d for d in (8, 4, 2, 1) if d <= B and B % d == 0)
    assert B % batch_block == 0, "B must be divisible by batch_block"
    num_programs = B // batch_block
    # Note(v7x): when B allows, prefer an even num_programs so both
    # TensorCores stay busy; on v5e/v6e this is a no-op.

    scale = 1.0 / math.sqrt(head_dim)
    mxu_dtype = jnp.bfloat16

    # One-time host-side re-layout + bf16 cast of all MXU weight operands.
    # The score scale is folded into the q projection (weights AND bias).
    w_hs_b = w_hs.astype(mxu_dtype)                               # (hs, in_seq)
    b_hs_c = b_hs.reshape(hidden_seq, 1).astype(jnp.float32)
    w_qkv_t = jnp.concatenate([w_q * scale, w_k, w_v],
                              axis=0).T.astype(mxu_dtype)         # (C, 3*OC)
    b_qkv_r = jnp.concatenate([b_q * scale, b_k, b_v]).reshape(
        1, 3 * out_channel).astype(jnp.float32)
    w_os_t = w_os.T.astype(mxu_dtype)                             # (hs, out_seq)
    b_os_r = b_os.reshape(1, out_seq).astype(jnp.float32)
    kparams = (w_hs_b, b_hs_c, w_qkv_t, b_qkv_r, w_os_t, b_os_r)

    x_b = x.astype(mxu_dtype)   # bf16 activations: halves input HBM->VMEM DMA

    def full_spec(arr):
        nd = arr.ndim
        return pl.BlockSpec(arr.shape, lambda g, _nd=nd: (0,) * _nd)

    in_specs = [pl.BlockSpec((batch_block, in_seq, in_channel),
                             lambda g: (g, 0, 0))]
    in_specs += [full_spec(p) for p in kparams]
    out_specs = pl.BlockSpec((batch_block, out_seq, out_channel),
                             lambda g: (g, 0, 0))

    # Advisory cost estimate so XLA schedules surrounding ops sensibly.
    flops = B * (
        2 * hidden_seq * in_seq * in_channel
        + 2 * hidden_seq * in_channel * 3 * out_channel
        + num_heads * (2 * hidden_seq * hidden_seq * head_dim
                       + 2 * hidden_seq * hidden_seq * out_seq
                       + 2 * hidden_seq * out_seq * head_dim))
    transcendentals = B * num_heads * (hidden_seq * hidden_seq + hidden_seq)
    bytes_accessed = (2 * x.size
                      + sum(int(np.prod(p.shape)) * p.dtype.itemsize
                            for p in kparams)
                      + 4 * B * out_seq * out_channel)

    kernel = _make_kernel(out_channel, num_heads, hidden_seq, batch_block)

    return pl.pallas_call(
        kernel,
        out_shape=jax.ShapeDtypeStruct((B, out_seq, out_channel), jnp.float32),
        grid_spec=pltpu.PrefetchScalarGridSpec(
            num_scalar_prefetch=0,
            grid=(num_programs,),
            in_specs=in_specs,
            out_specs=out_specs,
        ),
        compiler_params=pltpu.CompilerParams(
            dimension_semantics=("parallel",)),
        cost_estimate=pl.CostEstimate(
            flops=flops,
            transcendentals=transcendentals,
            bytes_accessed=bytes_accessed),
    )(x_b, *kparams)


def _reference(x, params, *, out_channel, hidden_seq, out_seq, num_heads):
    """Pure-JAX f32 reference matching the PyTorch forward (torch weight layout)."""
    (w_hs, b_hs, w_q, b_q, w_k, b_k, w_v, b_v, w_os, b_os) = params
    B, in_seq, in_channel = x.shape
    head_dim = out_channel // num_heads

    xp = jnp.einsum('bsc,hs->bch', x, w_hs) + b_hs             # (B, C, hidden)
    xp = jnp.transpose(xp, (0, 2, 1))                          # (B, hidden, C)

    q = xp @ w_q.T + b_q
    k = xp @ w_k.T + b_k
    v = xp @ w_v.T + b_v

    def split(t):
        return jnp.transpose(t.reshape(B, hidden_seq, num_heads, head_dim),
                             (0, 2, 1, 3))
    q, k, v = split(q), split(k), split(v)

    scores = jnp.einsum('bhqd,bhkd->bhqk', q, k) / math.sqrt(head_dim)
    attn = jax.nn.softmax(scores, axis=-1)
    flex = attn @ w_os.T + b_os                                # (B, H, hs, out_seq)
    out = jnp.einsum('bhso,bhsd->bhod', flex, v)               # (B, H, out_seq, hd)
    out = jnp.transpose(out, (0, 2, 1, 3)).reshape(B, out_seq,
                                                   num_heads * head_dim)
    return out


def _init_params(key, in_channel, out_channel, in_seq, hidden_seq, out_seq):
    """Deterministic nn.Linear-style init (uniform +/- 1/sqrt(fan_in))."""
    def linear(k, fan_in, fan_out):
        k1, k2 = jax.random.split(k)
        bound = 1.0 / math.sqrt(fan_in)
        w = jax.random.uniform(k1, (fan_out, fan_in), jnp.float32, -bound, bound)
        b = jax.random.uniform(k2, (fan_out,), jnp.float32, -bound, bound)
        return w, b

    keys = jax.random.split(key, 5)
    w_hs, b_hs = linear(keys[0], in_seq, hidden_seq)
    w_q, b_q = linear(keys[1], in_channel, out_channel)
    w_k, b_k = linear(keys[2], in_channel, out_channel)
    w_v, b_v = linear(keys[3], in_channel, out_channel)
    w_os, b_os = linear(keys[4], hidden_seq, out_seq)
    return (w_hs, b_hs, w_q, b_q, w_k, b_k, w_v, b_v, w_os, b_os)


if __name__ == "__main__":
    # small, module-consistent shapes
    B = 4
    in_channel = 8
    out_channel = 16
    in_seq = 16
    hidden_seq = 8
    out_seq = 8
    num_heads = 2

    key = jax.random.PRNGKey(0)
    kx, kp = jax.random.split(key)
    x = jax.random.normal(kx, (B, in_seq, in_channel), jnp.float32)
    params = _init_params(kp, in_channel, out_channel, in_seq, hidden_seq,
                          out_seq)

    out = flexscale_seq_attention(
        x, params, out_channel=out_channel, hidden_seq=hidden_seq,
        out_seq=out_seq, num_heads=num_heads, batch_block=2)   # grid = (2,)
    out = jax.block_until_ready(out)

    ref = _reference(x, params, out_channel=out_channel, hidden_seq=hidden_seq,
                     out_seq=out_seq, num_heads=num_heads)
    # Tolerance reflects bf16 MXU operands (f32 accumulate) + the EUP approx
    # reciprocal used for the deferred softmax normalization.
    np.testing.assert_allclose(np.asarray(out), np.asarray(ref),
                               rtol=3e-2, atol=3e-2)
    print("KERNEL_OK")
</pallas_src>

<mosaic_0001>
module attributes {stable_mosaic.version = 11 : i64} {
  func.func @kernel(%arg0: i32, %arg1: memref<2x16x8xbf16, #tpu.memory_space<vmem>>, %arg2: memref<8x16xbf16, #tpu.memory_space<vmem>>, %arg3: memref<8x1xf32, #tpu.memory_space<vmem>>, %arg4: memref<8x48xbf16, #tpu.memory_space<vmem>>, %arg5: memref<1x48xf32, #tpu.memory_space<vmem>>, %arg6: memref<8x8xbf16, #tpu.memory_space<vmem>>, %arg7: memref<1x8xf32, #tpu.memory_space<vmem>>, %arg8: memref<2x8x16xf32, #tpu.memory_space<vmem>>) attributes {dimension_semantics = [#tpu.dimension_semantics<parallel>], iteration_bounds = array<i64: 2>, scalar_prefetch = 0 : i64, scratch_operands = 0 : i64, tpu.core_type = #tpu.core_type<tc>, window_params = [{transform_indices = @transform_0, window_bounds = array<i64: 2, 16, 8>}, {pipeline_mode = #tpu.pipeline_mode<synchronous>, transform_indices = @transform_1, window_bounds = array<i64: 8, 16>}, {pipeline_mode = #tpu.pipeline_mode<synchronous>, transform_indices = @transform_2, window_bounds = array<i64: 8, 1>}, {pipeline_mode = #tpu.pipeline_mode<synchronous>, transform_indices = @transform_3, window_bounds = array<i64: 8, 48>}, {pipeline_mode = #tpu.pipeline_mode<synchronous>, transform_indices = @transform_4, window_bounds = array<i64: 1, 48>}, {pipeline_mode = #tpu.pipeline_mode<synchronous>, transform_indices = @transform_5, window_bounds = array<i64: 8, 8>}, {pipeline_mode = #tpu.pipeline_mode<synchronous>, transform_indices = @transform_6, window_bounds = array<i64: 1, 8>}, {transform_indices = @transform_7, window_bounds = array<i64: 2, 8, 16>}]} {
    %c0 = arith.constant 0 : index
    %c0_0 = arith.constant 0 : index
    %0 = vector.load %arg2[%c0, %c0_0] : memref<8x16xbf16, #tpu.memory_space<vmem>>, vector<8x16xbf16>
    %c0_1 = arith.constant 0 : index
    %c0_2 = arith.constant 0 : index
    %1 = vector.load %arg3[%c0_1, %c0_2] : memref<8x1xf32, #tpu.memory_space<vmem>>, vector<8x1xf32>
    %c0_3 = arith.constant 0 : index
    %c0_4 = arith.constant 0 : index
    %c0_5 = arith.constant 0 : index
    %2 = vector.load %arg1[%c0_3, %c0_4, %c0_5] : memref<2x16x8xbf16, #tpu.memory_space<vmem>>, vector<1x16x8xbf16>
    %3 = vector.shape_cast %2 : vector<1x16x8xbf16> to vector<16x8xbf16>
    %cst = arith.constant dense<0.000000e+00> : vector<8x8xf32>
    %4 = tpu.matmul %0, %3, %cst {dimension_numbers = #tpu.dot_dimension_numbers<[1], [0], [0], [1], [0, 0, 1, 1], [], []>} : vector<8x16xbf16>, vector<16x8xbf16>, vector<8x8xf32> -> vector<8x8xf32>
    %5 = vector.broadcast %1 : vector<8x1xf32> to vector<8x8xf32>
    %6 = arith.addf %4, %5 : vector<8x8xf32>
    %c1 = arith.constant 1 : index
    %c0_6 = arith.constant 0 : index
    %c0_7 = arith.constant 0 : index
    %7 = vector.load %arg1[%c1, %c0_6, %c0_7] : memref<2x16x8xbf16, #tpu.memory_space<vmem>>, vector<1x16x8xbf16>
    %8 = vector.shape_cast %7 : vector<1x16x8xbf16> to vector<16x8xbf16>
    %cst_8 = arith.constant dense<0.000000e+00> : vector<8x8xf32>
    %9 = tpu.matmul %0, %8, %cst_8 {dimension_numbers = #tpu.dot_dimension_numbers<[1], [0], [0], [1], [0, 0, 1, 1], [], []>} : vector<8x16xbf16>, vector<16x8xbf16>, vector<8x8xf32> -> vector<8x8xf32>
    %10 = vector.broadcast %1 : vector<8x1xf32> to vector<8x8xf32>
    %11 = arith.addf %9, %10 : vector<8x8xf32>
    %12 = tpu.concatenate %6, %11 in 0 : vector<8x8xf32>, vector<8x8xf32> -> vector<16x8xf32>
    %13 = arith.truncf %12 : vector<16x8xf32> to vector<16x8xbf16>
    %c0_9 = arith.constant 0 : index
    %c0_10 = arith.constant 0 : index
    %14 = vector.load %arg4[%c0_9, %c0_10] : memref<8x48xbf16, #tpu.memory_space<vmem>>, vector<8x48xbf16>
    %cst_11 = arith.constant dense<0.000000e+00> : vector<16x48xf32>
    %15 = tpu.matmul %13, %14, %cst_11 {dimension_numbers = #tpu.dot_dimension_numbers<[1], [0], [0], [1], [0, 0, 1, 1], [], []>} : vector<16x8xbf16>, vector<8x48xbf16>, vector<16x48xf32> -> vector<16x48xf32>
    %c0_12 = arith.constant 0 : index
    %c0_13 = arith.constant 0 : index
    %16 = vector.load %arg5[%c0_12, %c0_13] : memref<1x48xf32, #tpu.memory_space<vmem>>, vector<1x48xf32>
    %17 = vector.broadcast %16 : vector<1x48xf32> to vector<16x48xf32>
    %18 = arith.addf %15, %17 : vector<16x48xf32>
    %19 = arith.truncf %18 : vector<16x48xf32> to vector<16x48xbf16>
    %c0_14 = arith.constant 0 : index
    %c0_15 = arith.constant 0 : index
    %20 = vector.load %arg6[%c0_14, %c0_15] : memref<8x8xbf16, #tpu.memory_space<vmem>>, vector<8x8xbf16>
    %c0_16 = arith.constant 0 : index
    %c0_17 = arith.constant 0 : index
    %21 = vector.load %arg7[%c0_16, %c0_17] : memref<1x8xf32, #tpu.memory_space<vmem>>, vector<1x8xf32>
    %22 = vector.extract_strided_slice %19 {offsets = [0, 0], sizes = [8, 8], strides = [1, 1]} : vector<16x48xbf16> to vector<8x8xbf16>
    %23 = vector.extract_strided_slice %19 {offsets = [0, 16], sizes = [8, 8], strides = [1, 1]} : vector<16x48xbf16> to vector<8x8xbf16>
    %24 = vector.extract_strided_slice %19 {offsets = [0, 32], sizes = [8, 8], strides = [1, 1]} : vector<16x48xbf16> to vector<8x8xbf16>
    %cst_18 = arith.constant dense<0.000000e+00> : vector<8x8xf32>
    %25 = tpu.matmul %22, %23, %cst_18 {dimension_numbers = #tpu.dot_dimension_numbers<[1], [1], [0], [0], [0, 0, 1, 0], [], []>} : vector<8x8xbf16>, vector<8x8xbf16>, vector<8x8xf32> -> vector<8x8xf32>
    %cst_19 = arith.constant dense<0xFF800000> : vector<8xf32>
    %26 = vector.multi_reduction <maximumf>, %25, %cst_19 [1] : vector<8x8xf32> to vector<8xf32>
    %27 = vector.shape_cast %26 : vector<8xf32> to vector<8x1xf32>
    %28 = vector.broadcast %27 : vector<8x1xf32> to vector<8x8xf32>
    %29 = arith.subf %25, %28 : vector<8x8xf32>
    %30 = math.exp %29 : vector<8x8xf32>
    %cst_20 = arith.constant dense<0.000000e+00> : vector<8xf32>
    %31 = vector.multi_reduction <add>, %30, %cst_20 [1] : vector<8x8xf32> to vector<8xf32>
    %32 = vector.shape_cast %31 : vector<8xf32> to vector<8x1xf32>
    %33 = arith.truncf %30 : vector<8x8xf32> to vector<8x8xbf16>
    %cst_21 = arith.constant dense<0.000000e+00> : vector<8x8xf32>
    %34 = tpu.matmul %33, %20, %cst_21 {dimension_numbers = #tpu.dot_dimension_numbers<[1], [0], [0], [1], [0, 0, 1, 1], [], []>} : vector<8x8xbf16>, vector<8x8xbf16>, vector<8x8xf32> -> vector<8x8xf32>
    %35 = tpu.reciprocal %32 {approx = true} : vector<8x1xf32> -> vector<8x1xf32>
    %36 = vector.broadcast %35 : vector<8x1xf32> to vector<8x8xf32>
    %37 = arith.mulf %34, %36 : vector<8x8xf32>
    %38 = vector.broadcast %21 : vector<1x8xf32> to vector<8x8xf32>
    %39 = arith.addf %37, %38 : vector<8x8xf32>
    %40 = arith.truncf %39 : vector<8x8xf32> to vector<8x8xbf16>
    %cst_22 = arith.constant dense<0.000000e+00> : vector<8x8xf32>
    %41 = tpu.matmul %40, %24, %cst_22 {dimension_numbers = #tpu.dot_dimension_numbers<[0], [0], [1], [1], [0, 1, 1, 1], [], []>} : vector<8x8xbf16>, vector<8x8xbf16>, vector<8x8xf32> -> vector<8x8xf32>
    %42 = vector.extract_strided_slice %19 {offsets = [0, 8], sizes = [8, 8], strides = [1, 1]} : vector<16x48xbf16> to vector<8x8xbf16>
    %43 = vector.extract_strided_slice %19 {offsets = [0, 24], sizes = [8, 8], strides = [1, 1]} : vector<16x48xbf16> to vector<8x8xbf16>
    %44 = vector.extract_strided_slice %19 {offsets = [0, 40], sizes = [8, 8], strides = [1, 1]} : vector<16x48xbf16> to vector<8x8xbf16>
    %cst_23 = arith.constant dense<0.000000e+00> : vector<8x8xf32>
    %45 = tpu.matmul %42, %43, %cst_23 {dimension_numbers = #tpu.dot_dimension_numbers<[1], [1], [0], [0], [0, 0, 1, 0], [], []>} : vector<8x8xbf16>, vector<8x8xbf16>, vector<8x8xf32> -> vector<8x8xf32>
    %cst_24 = arith.constant dense<0xFF800000> : vector<8xf32>
    %46 = vector.multi_reduction <maximumf>, %45, %cst_24 [1] : vector<8x8xf32> to vector<8xf32>
    %47 = vector.shape_cast %46 : vector<8xf32> to vector<8x1xf32>
    %48 = vector.broadcast %47 : vector<8x1xf32> to vector<8x8xf32>
    %49 = arith.subf %45, %48 : vector<8x8xf32>
    %50 = math.exp %49 : vector<8x8xf32>
    %cst_25 = arith.constant dense<0.000000e+00> : vector<8xf32>
    %51 = vector.multi_reduction <add>, %50, %cst_25 [1] : vector<8x8xf32> to vector<8xf32>
    %52 = vector.shape_cast %51 : vector<8xf32> to vector<8x1xf32>
    %53 = arith.truncf %50 : vector<8x8xf32> to vector<8x8xbf16>
    %cst_26 = arith.constant dense<0.000000e+00> : vector<8x8xf32>
    %54 = tpu.matmul %53, %20, %cst_26 {dimension_numbers = #tpu.dot_dimension_numbers<[1], [0], [0], [1], [0, 0, 1, 1], [], []>} : vector<8x8xbf16>, vector<8x8xbf16>, vector<8x8xf32> -> vector<8x8xf32>
    %55 = tpu.reciprocal %52 {approx = true} : vector<8x1xf32> -> vector<8x1xf32>
    %56 = vector.broadcast %55 : vector<8x1xf32> to vector<8x8xf32>
    %57 = arith.mulf %54, %56 : vector<8x8xf32>
    %58 = vector.broadcast %21 : vector<1x8xf32> to vector<8x8xf32>
    %59 = arith.addf %57, %58 : vector<8x8xf32>
    %60 = arith.truncf %59 : vector<8x8xf32> to vector<8x8xbf16>
    %cst_27 = arith.constant dense<0.000000e+00> : vector<8x8xf32>
    %61 = tpu.matmul %60, %44, %cst_27 {dimension_numbers = #tpu.dot_dimension_numbers<[0], [0], [1], [1], [0, 1, 1, 1], [], []>} : vector<8x8xbf16>, vector<8x8xbf16>, vector<8x8xf32> -> vector<8x8xf32>
    %62 = tpu.concatenate %41, %61 in 1 : vector<8x8xf32>, vector<8x8xf32> -> vector<8x16xf32>
    %63 = vector.extract_strided_slice %19 {offsets = [8, 0], sizes = [8, 8], strides = [1, 1]} : vector<16x48xbf16> to vector<8x8xbf16>
    %64 = vector.extract_strided_slice %19 {offsets = [8, 16], sizes = [8, 8], strides = [1, 1]} : vector<16x48xbf16> to vector<8x8xbf16>
    %65 = vector.extract_strided_slice %19 {offsets = [8, 32], sizes = [8, 8], strides = [1, 1]} : vector<16x48xbf16> to vector<8x8xbf16>
    %cst_28 = arith.constant dense<0.000000e+00> : vector<8x8xf32>
    %66 = tpu.matmul %63, %64, %cst_28 {dimension_numbers = #tpu.dot_dimension_numbers<[1], [1], [0], [0], [0, 0, 1, 0], [], []>} : vector<8x8xbf16>, vector<8x8xbf16>, vector<8x8xf32> -> vector<8x8xf32>
    %cst_29 = arith.constant dense<0xFF800000> : vector<8xf32>
    %67 = vector.multi_reduction <maximumf>, %66, %cst_29 [1] : vector<8x8xf32> to vector<8xf32>
    %68 = vector.shape_cast %67 : vector<8xf32> to vector<8x1xf32>
    %69 = vector.broadcast %68 : vector<8x1xf32> to vector<8x8xf32>
    %70 = arith.subf %66, %69 : vector<8x8xf32>
    %71 = math.exp %70 : vector<8x8xf32>
    %cst_30 = arith.constant dense<0.000000e+00> : vector<8xf32>
    %72 = vector.multi_reduction <add>, %71, %cst_30 [1] : vector<8x8xf32> to vector<8xf32>
    %73 = vector.shape_cast %72 : vector<8xf32> to vector<8x1xf32>
    %74 = arith.truncf %71 : vector<8x8xf32> to vector<8x8xbf16>
    %cst_31 = arith.constant dense<0.000000e+00> : vector<8x8xf32>
    %75 = tpu.matmul %74, %20, %cst_31 {dimension_numbers = #tpu.dot_dimension_numbers<[1], [0], [0], [1], [0, 0, 1, 1], [], []>} : vector<8x8xbf16>, vector<8x8xbf16>, vector<8x8xf32> -> vector<8x8xf32>
    %76 = tpu.reciprocal %73 {approx = true} : vector<8x1xf32> -> vector<8x1xf32>
    %77 = vector.broadcast %76 : vector<8x1xf32> to vector<8x8xf32>
    %78 = arith.mulf %75, %77 : vector<8x8xf32>
    %79 = vector.broadcast %21 : vector<1x8xf32> to vector<8x8xf32>
    %80 = arith.addf %78, %79 : vector<8x8xf32>
    %81 = arith.truncf %80 : vector<8x8xf32> to vector<8x8xbf16>
    %cst_32 = arith.constant dense<0.000000e+00> : vector<8x8xf32>
    %82 = tpu.matmul %81, %65, %cst_32 {dimension_numbers = #tpu.dot_dimension_numbers<[0], [0], [1], [1], [0, 1, 1, 1], [], []>} : vector<8x8xbf16>, vector<8x8xbf16>, vector<8x8xf32> -> vector<8x8xf32>
    %83 = vector.extract_strided_slice %19 {offsets = [8, 8], sizes = [8, 8], strides = [1, 1]} : vector<16x48xbf16> to vector<8x8xbf16>
    %84 = vector.extract_strided_slice %19 {offsets = [8, 24], sizes = [8, 8], strides = [1, 1]} : vector<16x48xbf16> to vector<8x8xbf16>
    %85 = vector.extract_strided_slice %19 {offsets = [8, 40], sizes = [8, 8], strides = [1, 1]} : vector<16x48xbf16> to vector<8x8xbf16>
    %cst_33 = arith.constant dense<0.000000e+00> : vector<8x8xf32>
    %86 = tpu.matmul %83, %84, %cst_33 {dimension_numbers = #tpu.dot_dimension_numbers<[1], [1], [0], [0], [0, 0, 1, 0], [], []>} : vector<8x8xbf16>, vector<8x8xbf16>, vector<8x8xf32> -> vector<8x8xf32>
    %cst_34 = arith.constant dense<0xFF800000> : vector<8xf32>
    %87 = vector.multi_reduction <maximumf>, %86, %cst_34 [1] : vector<8x8xf32> to vector<8xf32>
    %88 = vector.shape_cast %87 : vector<8xf32> to vector<8x1xf32>
    %89 = vector.broadcast %88 : vector<8x1xf32> to vector<8x8xf32>
    %90 = arith.subf %86, %89 : vector<8x8xf32>
    %91 = math.exp %90 : vector<8x8xf32>
    %cst_35 = arith.constant dense<0.000000e+00> : vector<8xf32>
    %92 = vector.multi_reduction <add>, %91, %cst_35 [1] : vector<8x8xf32> to vector<8xf32>
    %93 = vector.shape_cast %92 : vector<8xf32> to vector<8x1xf32>
    %94 = arith.truncf %91 : vector<8x8xf32> to vector<8x8xbf16>
    %cst_36 = arith.constant dense<0.000000e+00> : vector<8x8xf32>
    %95 = tpu.matmul %94, %20, %cst_36 {dimension_numbers = #tpu.dot_dimension_numbers<[1], [0], [0], [1], [0, 0, 1, 1], [], []>} : vector<8x8xbf16>, vector<8x8xbf16>, vector<8x8xf32> -> vector<8x8xf32>
    %96 = tpu.reciprocal %93 {approx = true} : vector<8x1xf32> -> vector<8x1xf32>
    %97 = vector.broadcast %96 : vector<8x1xf32> to vector<8x8xf32>
    %98 = arith.mulf %95, %97 : vector<8x8xf32>
    %99 = vector.broadcast %21 : vector<1x8xf32> to vector<8x8xf32>
    %100 = arith.addf %98, %99 : vector<8x8xf32>
    %101 = arith.truncf %100 : vector<8x8xf32> to vector<8x8xbf16>
    %cst_37 = arith.constant dense<0.000000e+00> : vector<8x8xf32>
    %102 = tpu.matmul %101, %85, %cst_37 {dimension_numbers = #tpu.dot_dimension_numbers<[0], [0], [1], [1], [0, 1, 1, 1], [], []>} : vector<8x8xbf16>, vector<8x8xbf16>, vector<8x8xf32> -> vector<8x8xf32>
    %103 = tpu.concatenate %82, %102 in 1 : vector<8x8xf32>, vector<8x8xf32> -> vector<8x16xf32>
    %104 = vector.shape_cast %62 : vector<8x16xf32> to vector<1x8x16xf32>
    %105 = vector.shape_cast %103 : vector<8x16xf32> to vector<1x8x16xf32>
    %106 = tpu.concatenate %104, %105 in 0 : vector<1x8x16xf32>, vector<1x8x16xf32> -> vector<2x8x16xf32>
    %c0_38 = arith.constant 0 : index
    %c0_39 = arith.constant 0 : index
    %c0_40 = arith.constant 0 : index
    %107 = vector.load %arg8[%c0_38, %c0_39, %c0_40] : memref<2x8x16xf32, #tpu.memory_space<vmem>>, vector<2x8x16xf32>
    tpu.vector_store %arg8[%c0_38, %c0_39, %c0_40], %106 {strides = array<i32>} : memref<2x8x16xf32, #tpu.memory_space<vmem>>, vector<2x8x16xf32>,
    return
  }
  func.func @transform_0(%arg0: i32) -> (i32, i32, i32) {
    %c0_i32 = arith.constant 0 : i32
    %c0_i32_0 = arith.constant 0 : i32
    %c0_i32_1 = arith.constant 0 : i32
    return %arg0, %c0_i32, %c0_i32_0 : i32, i32, i32
  }
  func.func @transform_1(%arg0: i32) -> (i32, i32) {
    %c0_i32 = arith.constant 0 : i32
    %c0_i32_0 = arith.constant 0 : i32
    %c0_i32_1 = arith.constant 0 : i32
    return %c0_i32, %c0_i32_0 : i32, i32
  }
  func.func @transform_2(%arg0: i32) -> (i32, i32) {
    %c0_i32 = arith.constant 0 : i32
    %c0_i32_0 = arith.constant 0 : i32
    %c0_i32_1 = arith.constant 0 : i32
    return %c0_i32, %c0_i32_0 : i32, i32
  }
  func.func @transform_3(%arg0: i32) -> (i32, i32) {
    %c0_i32 = arith.constant 0 : i32
    %c0_i32_0 = arith.constant 0 : i32
    %c0_i32_1 = arith.constant 0 : i32
    return %c0_i32, %c0_i32_0 : i32, i32
  }
  func.func @transform_4(%arg0: i32) -> (i32, i32) {
    %c0_i32 = arith.constant 0 : i32
    %c0_i32_0 = arith.constant 0 : i32
    %c0_i32_1 = arith.constant 0 : i32
    return %c0_i32, %c0_i32_0 : i32, i32
  }
  func.func @transform_5(%arg0: i32) -> (i32, i32) {
    %c0_i32 = arith.constant 0 : i32
    %c0_i32_0 = arith.constant 0 : i32
    %c0_i32_1 = arith.constant 0 : i32
    return %c0_i32, %c0_i32_0 : i32, i32
  }
  func.func @transform_6(%arg0: i32) -> (i32, i32) {
    %c0_i32 = arith.constant 0 : i32
    %c0_i32_0 = arith.constant 0 : i32
    %c0_i32_1 = arith.constant 0 : i32
    return %c0_i32, %c0_i32_0 : i32, i32
  }
  func.func @transform_7(%arg0: i32) -> (i32, i32, i32) {
    %c0_i32 = arith.constant 0 : i32
    %c0_i32_0 = arith.constant 0 : i32
    %c0_i32_1 = arith.constant 0 : i32
    return %arg0, %c0_i32, %c0_i32_0 : i32, i32, i32
  }
}

</mosaic_0001>

<bundles_post_ra>
// kernel: tpu_custom_call.1
= control target key start
LH: loop header
LB: loop body
LE: loop exit
PB: predicated region body
PF: predicated region fallthrough
CT: control target
= control target key end

     0   :  { %12 = vsyncpa [#allocation3], 0  ;;  %s1824_s0 = inlined_call_operand.vmem [shape: bf16[4,16,8], index: 0, kind: input, shape index: {}]   ;;  %s1825_s1 = inlined_call_operand.vmem [shape: bf16[8,16], index: 1, kind: input, shape index: {}]   ;;  %s1826_s2 = inlined_call_operand.vmem [shape: f32[8,1], index: 2, kind: input, shape index: {}]   ;;  %s1827_s3 = inlined_call_operand.vmem [shape: bf16[8,48], index: 3, kind: input, shape index: {}]   ;;  %s1828_s4 = inlined_call_operand.vmem [shape: f32[1,48], index: 4, kind: input, shape index: {}]   ;;  %s1829_s5 = inlined_call_operand.vmem [shape: bf16[8,8], index: 5, kind: input, shape index: {}]   ;;  %s1830_s6 = inlined_call_operand.vmem [shape: f32[1,8], index: 6, kind: input, shape index: {}]   ;;  %s1831_s7 = inlined_call_operand.hbm [shape: f32[4,8,16], index: 7, kind: output, shape index: {}]  }
   0x1   :  { %14 = vsyncpa [#allocation3 + $0x1], 0  ;;  %s1569_s24 = smov 0   ;;  %s1571_s25 = smov 0  }
   0x2   :  { %s1573_s26 = smov 0   ;;  %s1575_s27 = smov 0  }
   0x3 LB: > { %s1590_s28 = sadd.s32 4294967295, %s1516_s27   ;;  %s1232_s29 = sadd.s32 4294967294, %s1516_s27   ;;  %s1516_s27 = sphi %s1575_s27, %s1837_s27   ;;  %s1512_s26 = sphi %s1573_s26, %s1836_s26   ;;  %s1508_s25 = sphi %s1571_s25, %s1835_s25   ;;  %s1504_s24 = sphi %s1569_s24, %s1834_s24  }
   0x4   : > { %s1594_s30 = sadd.s32 1, %s1516_s27   ;;  %s179_s8 = sadd.s32 1, %s1512_s26 }
   0x5   : > { %s176_s9 = ssub.s32 %s1516_s27, %s1594_s30  ;;  %p189_p0 = scmp.ne.s32.totalorder %s1512_s26, %s1508_s25 }
   0x6   : > { %p177_p1 = scmp.eq.s32.totalorder %s176_s9, 0  ;;  %p190_p2 = scmp.eq.s32.totalorder %s1590_s28, 1 }
   0x7   : > { %p195_p3 = scmp.ne.s32.totalorder %s1508_s25, %s1504_s24  ;;  %p196_p4 = scmp.eq.s32.totalorder %s1232_s29, 1 }
   0x8   : > { %s1605_s10 = scalar_select %p177_p1, %s1512_s26, %s179_s8  }
   0x9   : > { %p1607_p5 = por %p190_p2, %p189_p0  ;;  %p1611_p6 = por %p196_p4, %p195_p3 }
   0xa   : > { %p1235_p7 = scmp.ge.s32.totalorder %s1516_s27, 1  ;;  %p242_p8 = scmp.lt.s32.totalorder %s1516_s27, 3 }
   0xc   : > { %p243_p9 = pnand %p1235_p7, %p242_p8 }
   0xd   : > { %s1237_s13 = sshll.u32 (!%p243_p9), %s1590_s28, 1  ;;  %s1521_s9 = smov (!%p243_p9), 112  }
   0xe   : > { %246 = sbr.rel (%p243_p9) target bundleno = 2602 (0xa2a), region = 48  ;;  %p276_p10 = scmp.lt.s32.totalorder (!%p243_p9), %s1237_s13, 3 }
   0xf   : > { %s1524_s17 = smov (!%p243_p9), 96   ;;  %s1525_s20 = smov (!%p243_p9), 88  }
  0x10   : > { %s1526_s21 = smov (!%p243_p9), 8   ;;  %s272_s22 = sand.u32 (!%p243_p9), 1, %s1508_s25  }
  0x11   : > { %s1236_s23 = sshll.u32 (!%p243_p9), %s272_s22, 4 }
  0x12   : > { %s1762_s29 = scalar_lea.vmem (!%p243_p9), [#allocation2], %s1236_s23 }
  0x13   : > { %v1518_v0 = vmov 0.0   ;;  %v285_v1 = vld [vmem:[%s1826_s2] sm:$0xff]  ;;  %vm1519_vm0 = vmmov 0   ;;  %s1839_s13 = smov (!%p276_p10, %s1237_s13), 3  ;;  %v1520_v2 = vmov 0   ;;  %vm405_vm1 = vcmask 1043456  }
  0x14   : > { %1298 = vmatprep.subr.bf16.mxu0 %v1518_v0  ;;  %1304 = vmatprep.subr.bf16.mxu1 %v1518_v0  ;;  %s1266_s16 = sshll.u32 %s1839_s13, 3  ;;  %v393_v3 = vld [vmem:[%s1827_s3] sm:$0xf]  ;;  %vm299_vm2 = vcmask 130048   ;;  %vm401_vm3 = vcmask 64512   ;;  %s1522_s13 = smov 120  }
  0x15   : > { %1300 = vmatprep.mubr.msk.bf16.mxu0 %vm1519_vm0, %v1518_v0  ;;  %1306 = vmatprep.mubr.msk.bf16.mxu1 %vm1519_vm0, %v1518_v0  ;;  %s280_s19 = scalar_lea.vmem %s1824_s0, %s1266_s16  ;;  %v284_v6 = vld [vmem:[%s1825_s1] sm:$0xf]  ;;  %v407_v7 = vsel %vm405_vm1, %v393_v3, 0  ;;  %s1523_s16 = smov 104  }
  0x16   : > { %1437 = vset.pattern.permute.xlu0 %v1520_v2  ;;  %v1438_v4 = vld [vmem:[%s280_s19] sm:$0xff]   ;;  %v1439_v5 = vld [vmem:[%s280_s19 + $0x8] sm:$0xff]   ;;  %s1170_s8 = sshll.u32 %s1762_s29, 4  ;;  %s1771_s8 = int_to_ptr.vmem [resolvable:$true] %s1170_s8 }
  0x17   : > { %290 = vperm.xlu0 %1437, %v285_v1   ;;  %1299 = vmatpush3.bf16.msra.mxu0 %v1438_v4  ;;  %v1246_v21 = vld [vmem:[%s1828_s4] ss:$0 sm:$0xff] }
  0x18   : > { %1305 = vmatpush3.bf16.msra.mxu1 %v1439_v5  ;;  %1310 = vmatprep.subr.bf16.mxu0 %v1518_v0  ;;  %v451_v35 = vld [vmem:[%s1829_s5] sm:$0xf] }
  0x19   : > { %1316 = vmatprep.subr.bf16.mxu1 %v1518_v0  ;;  %v1669_v36 = vsel %vm405_vm1, %v451_v35, 0  ;;  %v1691_v50 = vld [vmem:[%s1830_s6] ss:$0 sm:$0xff] }
  0x1a   : > { %1301 = vmatmul.mubr.msk.bf16.vlgmr.msra.gmra.mxu0 %vm299_vm2, %v284_v6 }
  0x1b   : > { %1307 = vmatmul.mubr.msk.bf16.vlgmr.msra.gmra.mxu1 %vm299_vm2, %v284_v6  ;;  %1311 = vmatpush3.bf16.msra.mxu0 %v407_v7 }
  0x1c   : > { %1312 = vmatprep.mubr.msk.bf16.mxu0 %vm1519_vm0, %v1518_v0  ;;  %1318 = vmatprep.mubr.msk.bf16.mxu1 %vm1519_vm0, %v1518_v0 }
  0x1d   : > { %1322 = vmatprep.subr.bf16.mxu0 %v1518_v0 }
  0x92   : > { %v291_v8 = vpop.permute.xlu0 %290 }
  0xda   : > { %v337_v9 = vpop.f32.mrf.mxu0 }
  0xdb   : > { %v338_v10 = vadd.f32 %v337_v9, %v291_v8  ;;  %v386_v11 = vpop.f32.mrf.mxu1 }
  0xdc   : > { %v387_v12 = vadd.f32 %v386_v11, %v291_v8  ;;  %v1302_v13 = vpop.f32.mrf.mxu0 }
  0xdd   : > { %v1308_v14 = vpop.f32.mrf.mxu1 }
  0xde   : > { %v392_v15 = vpack.c.bf16 %v387_v12, %v338_v10  ;;  %v340_v16 = vpop.f32.mrf.mxu0 }
  0xdf   : > { %v389_v17 = vpop.f32.mrf.mxu1 }
  0xe0   : > { %1313 = vmatmul.mubr.msk.bf16.vlgmr.msra.gmra.mxu0 %vm401_vm3, %v392_v15  ;;  %v1303_v18 = vpop.f32.mrf.mxu0 }
  0xe1   : > { %v1309_v19 = vpop.f32.mrf.mxu1  ;;  %1324 = vmatprep.mubr.msk.bf16.mxu0 %vm1519_vm0, %v1518_v0  ;;  %1323 = vmatpush3.bf16.msra.mxu0 %v1669_v36 }
  0xe2   : > { %1334 = vmatprep.subr.bf16.mxu0 %v1518_v0 }
 0x1a0   : > { %v443_v20 = vpop.f32.mrf.mxu0 }
 0x1a1   : > { %v444_v24 = vadd.f32 %v1246_v21, %v443_v20 }
 0x1a2   : > { %v1314_v22 = vpop.f32.mrf.mxu0 }
 0x1a4   : > { %v446_v23 = vpop.f32.mrf.mxu0 }
 0x1a5   : > { %v447_v25 = vadd.f32 %v1246_v21, %v446_v23 }
 0x1a6   : > { %v1315_v26 = vpop.f32.mrf.mxu0 }
 0x1a7   : > { %v1652_v27 = vpack.c.bf16 %v447_v25, %v444_v24 }
 0x1a9   : > { %454 = vrot.lane.b32.xlu0 %v1652_v27, %s1521_s9  ;;  %v1696_v63 = vrot.slane %v1652_v27, 4 }
 0x1ad   : > { %632 = vrot.lane.b32.xlu0 %v1652_v27, %s1522_s13 }
 0x21b   : > { %v455_v28 = vpop.permute.xlu0 %454 }
 0x21c   : > { %v460_v29 = vsel %vm401_vm3, %v455_v28, 0 }
 0x21d   : > { %1317 = vmatpush3.bf16.xpose.msra.mxu1 %v460_v29 }
 0x21e   : > { %1328 = vmatprep.subr.bf16.mxu1 %v1518_v0 }
 0x21f   : > { %v633_v45 = vpop.permute.xlu0 %632 }
 0x224   : > { %1319 = vmatmul.mubr.msk.bf16.vlgmr.msra.gmra.mxu1 %vm401_vm3, %v1652_v27 }
 0x225   : > { %1330 = vmatprep.mubr.msk.bf16.mxu1 %vm1519_vm0, %v1518_v0 }
 0x2e4   : > { %v496_v30 = vpop.f32.mrf.mxu1 }
 0x2e5   : > { %v502_v31 = vsel %vm401_vm3, %v496_v30, -inf }
 0x2e6   : > { %503 = vmax.xlane.f32.xlu1 %v502_v31  ;;  %v1320_v32 = vpop.f32.mrf.mxu1 }
 0x2e8   : > { %v499_v33 = vpop.f32.mrf.mxu1 }
 0x2ea   : > { %v1321_v34 = vpop.f32.mrf.mxu1 }
 0x2f7   : > { %634 = vrot.lane.b32.xlu1 %v1652_v27, %s1523_s16 }
 0x36f   : > { %v504_v37 = vpop.xlane.xlu1 %503 }
 0x370   : > { %v505_v38 = vsub.f32 %v496_v30, %v504_v37 }
 0x372   : > { %v506_v39 = vmul.f32 1.442695, %v505_v38 }
 0x373   : > { %v635_v41 = vpop.permute.xlu1 %634 }
 0x374   : > { %1440 = vpow2.f32 %v506_v39  ;;  %v640_v44 = vsel %vm401_vm3, %v635_v41, 0 }
 0x381   : > { %v1441_v40 = vpop.eup %1440 }
 0x382   : > { %v508_v42 = vsel %vm401_vm3, %v1441_v40, 0.0  ;;  %v511_v43 = vpack.c.bf16 %v1441_v40, %v1441_v40 }
 0x383   : > { %509 = vadd.xlane.f32.xlu0 %v508_v42 }
 0x384   : > { %1325 = vmatmul.mubr.msk.bf16.vlgmr.msra.gmra.mxu0 %vm401_vm3, %v511_v43 }
 0x385   : > { %1335 = vmatpush3.bf16.xpose.msra.mxu0 %v640_v44  ;;  %1336 = vmatprep.mubr.msk.bf16.mxu0 %vm1519_vm0, %v1518_v0 }
 0x386   : > { %1346 = vmatprep.subr.bf16.mxu0 %v1518_v0 }
 0x38c   : > { %1337 = vmatmul.mubr.msk.bf16.vlgmr.msra.gmra.mxu0 %vm401_vm3, %v633_v45 }
 0x38d   : > { %1348 = vmatprep.mubr.msk.bf16.mxu0 %vm1519_vm0, %v1518_v0 }
 0x399   : > { %584 = vrot.lane.b32.xlu0 %v1652_v27, %s1524_s17 }
 0x40c   : > { %v510_v46 = vpop.xlane.xlu0 %509 }
 0x40d   : > { %1442 = vrcp.f32 %v510_v46 }
 0x410   : > { %v585_v47 = vpop.permute.xlu0 %584 }
 0x411   : > { %v590_v48 = vsel %vm405_vm1, %v585_v47, 0 }
 0x412   : > { %1329 = vmatpush3.bf16.msra.mxu1 %v590_v48 }
 0x413   : > { %1340 = vmatprep.subr.bf16.mxu1 %v1518_v0 }
 0x41a   : > { %v1443_v49 = vpop.eup %1442 }
 0x444   : > { %v552_v51 = vpop.f32.mrf.mxu0 }
 0x445   : > { %v559_v52 = vmul.f32 %v1443_v49, %v552_v51 }
 0x446   : > { %v1326_v53 = vpop.f32.mrf.mxu0 }
 0x447   : > { %v566_v54 = vadd.f32 %v1691_v50, %v559_v52 }
 0x448   : > { %v555_v55 = vpop.f32.mrf.mxu0 }
 0x449   : > { %v567_v56 = vpack.c.bf16 %v566_v54, %v566_v54 }
 0x44a   : > { %v1327_v57 = vpop.f32.mrf.mxu0 }
 0x44b   : > { %568 = vxpose.xlu0.c.b16.start.end [1/1] (short) (narrow) %v567_v56, 16 }
 0x44c   : > { %v676_v58 = vpop.f32.mrf.mxu0 }
 0x44d   : > { %v682_v59 = vsel %vm401_vm3, %v676_v58, -inf }
 0x44e   : > { %683 = vmax.xlane.f32.xlu1 %v682_v59  ;;  %v1338_v60 = vpop.f32.mrf.mxu0 }
 0x450   : > { %v679_v61 = vpop.f32.mrf.mxu0 }
 0x452   : > { %v1339_v62 = vpop.f32.mrf.mxu0 }
 0x45f   : > { %809 = vrot.lane.b32.xlu1 %v1696_v63, %s1521_s9  ;;  %s1267_s9 = sshll.u32 %s1590_s28, 8  ;;  %s1527_s28 = smov [#allocation2]  }
 0x460   : > { %s1776_s15 = scalar_lea.hbm %s1831_s7, %s1267_s9  ;;  %s1460_s18 = sshll.u32 %s1527_s28, 4  ;;  %s1461_s18 = int_to_ptr.vmem [resolvable:$false] %s1460_s18 }
 0x461   : > { %s1462_s19 = scalar_lea.vmem %s1461_s18, 512  ;;  %p1463_p0 = scmp.lt.s32.totalorder %s1771_s8, %s1461_s18 }
 0x4ad   : > { %v576_v1 = vpop.trf.xlu0 }
 0x4ae   : > { %1331 = vmatmul.mubr.msk.bf16.vlgmr.msra.gmra.mxu1 %vm401_vm3, %v576_v1 }
 0x4af   : > { %1341 = vmatpush3.bf16.msra.mxu1 %v1669_v36  ;;  %1342 = vmatprep.mubr.msk.bf16.mxu1 %vm1519_vm0, %v1518_v0 }
 0x4b0   : > { %1352 = vmatprep.subr.bf16.mxu1 %v1518_v0 }
 0x4d7   : > { %v684_v2 = vpop.xlane.xlu1 %683 }
 0x4d8   : > { %v685_v3 = vsub.f32 %v676_v58, %v684_v2 }
 0x4da   : > { %v686_v4 = vmul.f32 1.442695, %v685_v3 }
 0x4db   : > { %v810_v6 = vpop.permute.xlu1 %809 }
 0x4dc   : > { %1444 = vpow2.f32 %v686_v4  ;;  %v815_v9 = vsel %vm401_vm3, %v810_v6, 0 }
 0x4e9   : > { %v1445_v5 = vpop.eup %1444 }
 0x4ea   : > { %v688_v7 = vsel %vm401_vm3, %v1445_v5, 0.0  ;;  %v691_v8 = vpack.c.bf16 %v1445_v5, %v1445_v5 }
 0x4eb   : > { %689 = vadd.xlane.f32.xlu1 %v688_v7 }
 0x4ec   : > { %1343 = vmatmul.mubr.msk.bf16.vlgmr.msra.gmra.mxu1 %vm401_vm3, %v691_v8 }
 0x4ed   : > { %1353 = vmatpush3.bf16.xpose.msra.mxu1 %v815_v9  ;;  %1354 = vmatprep.mubr.msk.bf16.mxu1 %vm1519_vm0, %v1518_v0 }
 0x4ee   : > { %1364 = vmatprep.subr.bf16.mxu1 %v1518_v0 }
 0x4f4   : > { %1355 = vmatmul.mubr.msk.bf16.vlgmr.msra.gmra.mxu1 %vm401_vm3, %v1696_v63 }
 0x4f5   : > { %1366 = vmatprep.mubr.msk.bf16.mxu1 %vm1519_vm0, %v1518_v0 }
 0x4fc   : > { %980 = vrot.lane.b32.xlu1 %v1696_v63, %s1523_s16  ;;  %s1783_s16 = scalar_lea.sflag [#allocation3], %s272_s22 }
 0x500   : > { %978 = vrot.lane.b32.xlu1 %v1696_v63, %s1522_s13 }
 0x56e   : > { %v1719_v10 = vpop.f32.mrf.mxu1 }
 0x570   : > { %v1332_v11 = vpop.f32.mrf.mxu1 }
 0x572   : > { %v629_v12 = vpop.f32.mrf.mxu1 }
 0x574   : > { %v1333_v13 = vpop.f32.mrf.mxu1  ;;  %v690_v23 = vpop.xlane.xlu1 %689 }
 0x575   : > { %1446 = vrcp.f32 %v690_v23 }
 0x578   : > { %v981_v35 = vpop.permute.xlu1 %980 }
 0x579   : > { %v986_v39 = vsel %vm401_vm3, %v981_v35, 0 }
 0x57c   : > { %v979_v40 = vpop.permute.xlu1 %978 }
 0x582   : > { %v1447_v24 = vpop.eup %1446 }
 0x5ac   : > { %v729_v14 = vpop.f32.mrf.mxu1 }
 0x5ad   : > { %v736_v25 = vmul.f32 %v1447_v24, %v729_v14 }
 0x5ae   : > { %v1344_v15 = vpop.f32.mrf.mxu1 }
 0x5af   : > { %v737_v26 = vadd.f32 %v1691_v50, %v736_v25 }
 0x5b0   : > { %v732_v16 = vpop.f32.mrf.mxu1 }
 0x5b1   : > { %v738_v28 = vpack.c.bf16 %v737_v26, %v737_v26 }
 0x5b2   : > { %v1345_v17 = vpop.f32.mrf.mxu1 }
 0x5b4   : > { %v851_v18 = vpop.f32.mrf.mxu1 }
 0x5b5   : > { %v857_v19 = vsel %vm401_vm3, %v851_v18, -inf }
 0x5b6   : > { %858 = vmax.xlane.f32.xlu0 %v857_v19  ;;  %v1356_v20 = vpop.f32.mrf.mxu1 }
 0x5b8   : > { %v854_v21 = vpop.f32.mrf.mxu1 }
 0x5ba   : > { %v1357_v22 = vpop.f32.mrf.mxu1 }
 0x5cc   : > { %755 = vrot.lane.b32.xlu0 %v1652_v27, %s1525_s20 }
 0x5ea   : > { %739 = vxpose.xlu0.c.b16.start.end [1/1] (short) (narrow) %v738_v28, 16 }
 0x63f   : > { %v859_v29 = vpop.xlane.xlu0 %858 }
 0x640   : > { %v860_v30 = vsub.f32 %v851_v18, %v859_v29 }
 0x642   : > { %v861_v31 = vmul.f32 1.442695, %v860_v30 }
 0x643   : > { %v756_v32 = vpop.permute.xlu0 %755 }
 0x644   : > { %1448 = vpow2.f32 %v861_v31  ;;  %v761_v33 = vsel %vm405_vm1, %v756_v32, 0 }
 0x645   : > { %1347 = vmatpush3.bf16.msra.mxu0 %v761_v33 }
 0x646   : > { %1358 = vmatprep.subr.bf16.mxu0 %v1518_v0 }
 0x64c   : > { %v747_v34 = vpop.trf.xlu0 }
 0x64d   : > { %1349 = vmatmul.mubr.msk.bf16.vlgmr.msra.gmra.mxu0 %vm401_vm3, %v747_v34 }
 0x64e   : > { %1359 = vmatpush3.bf16.msra.mxu0 %v1669_v36  ;;  %1360 = vmatprep.mubr.msk.bf16.mxu0 %vm1519_vm0, %v1518_v0 }
 0x64f   : > { %1370 = vmatprep.subr.bf16.mxu0 %v1518_v0 }
 0x651   : > { %v1449_v27 = vpop.eup %1448 }
 0x652   : > { %v863_v37 = vsel %vm401_vm3, %v1449_v27, 0.0  ;;  %v866_v38 = vpack.c.bf16 %v1449_v27, %v1449_v27 }
 0x653   : > { %864 = vadd.xlane.f32.xlu1 %v863_v37 }
 0x655   : > { %1361 = vmatmul.mubr.msk.bf16.vlgmr.msra.gmra.mxu0 %vm401_vm3, %v866_v38 }
 0x656   : > { %1371 = vmatpush3.bf16.xpose.msra.mxu0 %v986_v39  ;;  %1372 = vmatprep.mubr.msk.bf16.mxu0 %vm1519_vm0, %v1518_v0 }
 0x657   : > { %1382 = vmatprep.subr.bf16.mxu0 %v1518_v0 }
 0x65d   : > { %1373 = vmatmul.mubr.msk.bf16.vlgmr.msra.gmra.mxu0 %vm401_vm3, %v979_v40 }
 0x65e   : > { %1384 = vmatprep.mubr.msk.bf16.mxu0 %vm1519_vm0, %v1518_v0 }
 0x664   : > { %930 = vrot.lane.b32.xlu1 %v1696_v63, %s1524_s17  ;;  %s1456_s17 = scalar_lea.vmem %s1771_s8, 256 }
 0x665   : > { %p1457_p11 = scmp.ne.s32.totalorder %s1771_s8, %s1456_s17  ;;  %p1464_p1 = scmp.lt.s32.totalorder %s1462_s19, %s1456_s17 }
 0x667   : > { %p1458_p12 = pnand %p1457_p11, %p1607_p5  ;;  %p1465_p2 = por %p1464_p1, %p1463_p0 }
 0x669   : > { %p1459_p13 = pneg %p1458_p12 }
 0x66b   : > { %p1466_p3 = pnand %p1465_p2, %p1459_p13 }
 0x6dc   : > { %v865_v41 = vpop.xlane.xlu1 %864 }
 0x6dd   : > { %1450 = vrcp.f32 %v865_v41 }
 0x6e0   : > { %v931_v42 = vpop.permute.xlu1 %930 }
 0x6e1   : > { %v936_v43 = vsel %vm405_vm1, %v931_v42, 0 }
 0x6e2   : > { %1365 = vmatpush3.bf16.msra.mxu1 %v936_v43 }
 0x6e3   : > { %1376 = vmatprep.subr.bf16.mxu1 %v1518_v0 }
 0x6ea   : > { %v1451_v58 = vpop.eup %1450 }
 0x70d   : > { %v797_v44 = vpop.f32.mrf.mxu0 }
 0x70f   : > { %v1350_v45 = vpop.f32.mrf.mxu0 }
 0x711   : > { %v800_v46 = vpop.f32.mrf.mxu0 }
 0x713   : > { %v1351_v47 = vpop.f32.mrf.mxu0 }
 0x715   : > { %v904_v48 = vpop.f32.mrf.mxu0 }
 0x716   : > { %v911_v59 = vmul.f32 %v1451_v58, %v904_v48 }
 0x717   : > { %v1362_v49 = vpop.f32.mrf.mxu0 }
 0x718   : > { %v912_v60 = vadd.f32 %v1691_v50, %v911_v59 }
 0x719   : > { %v907_v51 = vpop.f32.mrf.mxu0 }
 0x71a   : > { %v913_v61 = vpack.c.bf16 %v912_v60, %v912_v60 }
 0x71b   : > { %v1363_v52 = vpop.f32.mrf.mxu0 }
 0x71d   : > { %v1022_v53 = vpop.f32.mrf.mxu0 }
 0x71e   : > { %v1028_v54 = vsel %vm401_vm3, %v1022_v53, -inf }
 0x71f   : > { %1029 = vmax.xlane.f32.xlu0 %v1028_v54  ;;  %v1374_v55 = vpop.f32.mrf.mxu0 }
 0x721   : > { %v1025_v56 = vpop.f32.mrf.mxu0 }
 0x723   : > { %v1375_v57 = vpop.f32.mrf.mxu0 }
 0x74c   : > { %914 = vxpose.xlu0.c.b16.start.end [1/1] (short) (narrow) %v913_v61, 16 }
 0x755   : > { %1101 = vrot.lane.b32.xlu0 %v1696_v63, %s1525_s20 }
 0x759   : > { %804 = vrot.lane.b32.xlu0 %v797_v44, %s1526_s21 }
 0x7a8   : > { %v1030_v62 = vpop.xlane.xlu0 %1029 }
 0x7a9   : > { %v1031_v1 = vsub.f32 %v1022_v53, %v1030_v62 }
 0x7ab   : > { %v1032_v2 = vmul.f32 1.442695, %v1031_v1 }
 0x7ad   : > { %1452 = vpow2.f32 %v1032_v2 }
 0x7ae   : > { %v922_v3 = vpop.trf.xlu0 }
 0x7af   : > { %1367 = vmatmul.mubr.msk.bf16.vlgmr.msra.gmra.mxu1 %vm401_vm3, %v922_v3 }
 0x7b0   : > { %1377 = vmatpush3.bf16.msra.mxu1 %v1669_v36  ;;  %1378 = vmatprep.mubr.msk.bf16.mxu1 %vm1519_vm0, %v1518_v0 }
 0x7ba   : > { %v1453_v4 = vpop.eup %1452 }
 0x7bb   : > { %v1034_v63 = vsel %vm401_vm3, %v1453_v4, 0.0  ;;  %v1037_v5 = vpack.c.bf16 %v1453_v4, %v1453_v4 }
 0x7bc   : > { %1035 = vadd.xlane.f32.xlu1 %v1034_v63 }
 0x7bd   : > { %1379 = vmatmul.mubr.msk.bf16.vlgmr.msra.gmra.mxu1 %vm401_vm3, %v1037_v5 }
 0x7c7   : > { %v1102_v6 = vpop.permute.xlu0 %1101 }
 0x7c8   : > { %v1107_v7 = vsel %vm405_vm1, %v1102_v6, 0 }
 0x7c9   : > { %1383 = vmatpush3.bf16.msra.mxu0 %v1107_v7 }
 0x7cb   : > { %v805_v8 = vpop.permute.xlu0 %804 }
 0x7cc   : > { %v807_v36 = vsel %vm401_vm3, %v1719_v10, %v805_v8 }
 0x7cd   : > { %1154 = vst.msk [vmem:[%s1762_s29] sm:$0xff] %vm299_vm2, %v807_v36 }
 0x845   : > { %v1036_v0 = vpop.xlane.xlu1 %1035 }
 0x846   : > { %1454 = vrcp.f32 %v1036_v0 }
 0x853   : > { %v1455_v14 = vpop.eup %1454 }
 0x86f   : > { %v972_v9 = vpop.f32.mrf.mxu1 }
 0x871   : > { %v1368_v11 = vpop.f32.mrf.mxu1 }
 0x873   : > { %v975_v12 = vpop.f32.mrf.mxu1 }
 0x875   : > { %v1369_v13 = vpop.f32.mrf.mxu1 }
 0x87d   : > { %v1075_v15 = vpop.f32.mrf.mxu1 }
 0x87e   : > { %v1082_v16 = vmul.f32 %v1455_v14, %v1075_v15 }
 0x87f   : > { %v1380_v17 = vpop.f32.mrf.mxu1 }
 0x880   : > { %v1083_v18 = vadd.f32 %v1691_v50, %v1082_v16 }
 0x881   : > { %v1078_v10 = vpop.f32.mrf.mxu1 }
 0x882   : > { %v1084_v19 = vpack.c.bf16 %v1083_v18, %v1083_v18 }
 0x883   : > { %v1381_v20 = vpop.f32.mrf.mxu1 }
 0x884   : > { %1085 = vxpose.xlu1.c.b16.start.end [1/1] (short) (narrow) %v1084_v19, 16 }
 0x8e6   : > { %v1093_v21 = vpop.trf.xlu1 }
 0x8e7   : > { %1385 = vmatmul.mubr.msk.bf16.vlgmr.msra.gmra.mxu0 %vm401_vm3, %v1093_v21 }
 0x9a7   : > { %v1143_v22 = vpop.f32.mrf.mxu0 }
 0x9a8   : > { %1150 = vrot.lane.b32.xlu0 %v1143_v22, %s1526_s21 }
 0x9a9   : > { %v1386_v23 = vpop.f32.mrf.mxu0 }
 0x9ab   : > { %v1146_v24 = vpop.f32.mrf.mxu0 }
 0x9ad   : > { %v1387_v25 = vpop.f32.mrf.mxu0 }
 0xa1a   : > { %v1151_v50 = vpop.permute.xlu0 %1150 }
 0xa1b   : > { %v1153_v26 = vsel %vm401_vm3, %v972_v9, %v1151_v50 }
 0xa1c   : > { %1155 = vst.msk [vmem:[%s1762_s29 + $0x8] sm:$0xff] %vm299_vm2, %v1153_v26 }
 0xa1d   : > { %1469 = shalt.err (!%p1466_p3)
}
 0xa1e   : > { %s1470_s20 = scalar_lea.hbm %s1776_s15, 256  ;;  %s1474_s29 = scalar_lea.hbm %s1831_s7, 512 }
 0xa1f   : > { %p1471_p4 = scmp.ne.s32.totalorder %s1776_s15, %s1470_s20  ;;  %p1475_p9 = scmp.lt.s32.totalorder %s1776_s15, %s1831_s7 }
 0xa20   : > { %p1476_p10 = scmp.lt.s32.totalorder %s1474_s29, %s1470_s20 }
 0xa21   : > { %p1472_p7 = pnand %p1471_p4, %p1607_p5 }
 0xa22   : > { %p1477_p11 = por %p1476_p10, %p1475_p9 }
 0xa23   : > { %p1473_p8 = pneg %p1472_p7 }
 0xa25   : > { %p1478_p12 = pnand %p1477_p11, %p1473_p8 }
 0xa27   : > { %1481 = shalt.err (!%p1478_p12)
}
 0xa28   : > { %s1528_s14 = smov 128  }
 0xa29   : > { %1388 = dma.vmem_to_hbm [thread:$0]  (%p1607_p5), %s1771_s8, 256, %s1776_s15, %s1783_s16, %s1528_s14, %s1528_s14, %s1526_s21  }
 0xa2a PF: > { %p1394_p13 = scmp.ge.s32.totalorder %s1516_s27, 2  ;;  %s1185_s17 = sand.u32 1, %s1504_s24  }
 0xa2b   : > { %s1186_s28 = scalar_lea.sflag [#allocation3], %s1185_s17 }
 0xa2c   : > { %p1391_p0 = pnand %p1394_p13, %p1611_p6 }
 0xa2e   : > { %p1392_p1 = pneg %p1391_p0 }
 0xa30   : > { %1499 = dma.done.wait (%p1392_p1), %s1186_s28, 256  }
 0xa31   : > { %1501 = vsyncadd (%p1392_p1), %s1186_s28, 4294967040  ;;  %p17_p2 = scmp.ge.s32.totalorder %s1594_s30, 4   ;;  %s1834_s24 = smov %s1508_s25 }
 0xa32   : > { %s1835_s25 = smov %s1512_s26  ;;  %s1836_s26 = smov %s1605_s10 }
 0xa33   : > { %s1837_s27 = smov %s1594_s30  ;;  %19 = sbr.rel (!%p17_p2) target bundleno = 3 (0x3), region = 84 }
 0xa38   :  { %1191 = vsyncpa [#allocation3], 1 }
 0xa39   :  { %1193 = vsyncpa [#allocation3 + $0x1], 1 }

</bundles_post_ra>
